<compile_context>
chip_gen: v6e
topology: v6e:2x2x1
jax: 0.10.0
libtpu: 0.0.40
codegen_flags: <defaults>
</compile_context>

<pallas_src>
import functools

import jax
import jax.numpy as jnp
from jax.experimental import pallas as pl
from jax.experimental.pallas import tpu as pltpu


def _round_up(x, m):
    return ((x + m - 1) // m) * m


def _embed_kernel(tile_n, p_pad, pos_ref, tab_ref, o_ref):
    # pos_ref: (n_pad, 2) int32, VMEM-resident (loaded once, single buffer).
    # tab_ref: (2*p_pad, d_model) block-diagonal table, VMEM-resident.
    # o_ref:   (tile_n, d_model) output tile for this grid step.
    start = pl.multiple_of(pl.program_id(0) * tile_n, tile_n)
    pos = pos_ref[pl.ds(start, tile_n), :]                      # (tile_n, 2)

    # One-hot gather on the MXU: row r selects lane pos_x[r] (top-left table
    # block) and lane p_pad + pos_y[r] (bottom-right table block), so the
    # matmul result is already concat([x_emb, y_emb], -1) and lane-dense.
    iota = jax.lax.broadcasted_iota(jnp.int32, (tile_n, 2 * p_pad), 1)
    onehot = (iota == pos[:, 0:1]) | (iota == pos[:, 1:2] + p_pad)
    onehot = onehot.astype(tab_ref.dtype)

    o_ref[...] = jnp.dot(
        onehot, tab_ref[...], preferred_element_type=jnp.float32
    ).astype(o_ref.dtype)


def learned_positional_embedding(positions, emb_x, emb_y, *, tile_n=1024):
    """positions: [N, 2] int; emb_x/emb_y: [max_position, d_half], same dtype.

    Note: out-of-range / negative indices yield an all-zero output row instead
    of raising (unlike torch.nn.Embedding).
    """
    assert emb_x.shape == emb_y.shape, (emb_x.shape, emb_y.shape)
    assert emb_x.dtype == emb_y.dtype, (emb_x.dtype, emb_y.dtype)

    n = positions.shape[0]
    max_position, d_half = emb_x.shape
    d_model = 2 * d_half
    dtype = emb_x.dtype
    itemsize = jnp.dtype(dtype).itemsize

    # Pad the gather / MXU-contraction dim to a multiple of 128.
    p_pad = _round_up(max_position, 128)

    # Block-diagonal combined table: one matmul -> lane-dense concat output.
    table = jnp.zeros((2 * p_pad, d_model), dtype=dtype)
    table = table.at[:max_position, :d_half].set(emb_x)
    table = table.at[p_pad:p_pad + max_position, d_half:].set(emb_y)
    table_bytes = table.size * itemsize

    positions = positions.astype(jnp.int32)

    # Row-tile sizing: big tiles (HBM-writeback bound), shrink only if the
    # per-tile VMEM working set would blow the budget (safe for v5e/v6e 128 MiB
    # and v7x 64 MiB physical VMEM).
    tile_n = max(8, min(_round_up(tile_n, 8), _round_up(n, 8)))
    per_row_bytes = (
        2 * d_model * itemsize      # double-buffered output tile
        + 2 * p_pad * itemsize      # one-hot operand
        + d_model * 4               # f32 matmul result
        + 2 * 4                     # positions slice
    )
    tile_budget = 24 * 1024 * 1024
    while tile_n > 8 and tile_n * per_row_bytes > tile_budget:
        tile_n = max(8, _round_up(tile_n // 2, 8))

    n_pad = _round_up(n, tile_n)
    if n_pad != n:
        # Padded rows gather row 0; they are sliced off below.
        positions = jnp.pad(positions, ((0, n_pad - n), (0, 0)))

    vmem_needed = table_bytes + n_pad * 2 * 4 + tile_n * per_row_bytes
    vmem_limit = int(min(max(2 * vmem_needed, 32 * 1024 * 1024),
                         64 * 1024 * 1024))

    grid_spec = pltpu.PrefetchScalarGridSpec(
        num_scalar_prefetch=0,
        grid=(n_pad // tile_n,),
        in_specs=[
            # Positions: whole array, loaded once, single buffer; kernel slices.
            pl.BlockSpec((n_pad, 2), lambda i: (0, 0),
                         pipeline_mode=pl.Buffered(1)),
            # Table: whole array, loaded once, single buffer.
            pl.BlockSpec((2 * p_pad, d_model), lambda i: (0, 0),
                         pipeline_mode=pl.Buffered(1)),
        ],
        out_specs=pl.BlockSpec((tile_n, d_model), lambda i: (i, 0)),
    )

    out = pl.pallas_call(
        functools.partial(_embed_kernel, tile_n, p_pad),
        out_shape=jax.ShapeDtypeStruct((n_pad, d_model), dtype),
        grid_spec=grid_spec,
        compiler_params=pltpu.CompilerParams(
            # Independent row tiles -> sharded across v7x's 2 TCs; neutral elsewhere.
            dimension_semantics=("parallel",),
            vmem_limit_bytes=vmem_limit,
        ),
    )(positions, table)

    # TODO(synk): when table_bytes exceeds ~1/4 of scoped VMEM (first on v7x),
    # switch the table to memory_space=pl.ANY with a manual double-buffered DMA
    # row gather (pattern P4) instead of the VMEM-resident one-hot matmul.
    return out[:n]


def _reference(positions, emb_x, emb_y):
    return jnp.concatenate(
        [emb_x[positions[:, 0]], emb_y[positions[:, 1]]], axis=-1
    )


if __name__ == "__main__":
    key = jax.random.PRNGKey(0)
    k_pos, k_x, k_y, k_pos2, k_x2, k_y2 = jax.random.split(key, 6)

    # Config 1: lane-aligned halves (d_half = 128), N not a multiple of the tile.
    max_position, d_model, n = 16, 256, 200
    emb_x = jax.random.normal(k_x, (max_position, d_model // 2), dtype=jnp.float32)
    emb_y = jax.random.normal(k_y, (max_position, d_model // 2), dtype=jnp.float32)
    positions = jax.random.randint(k_pos, (n, 2), 0, max_position, dtype=jnp.int32)

    # Default big-tile path (clamped to N rounded to 8 -> single grid step).
    out1 = jax.block_until_ready(
        learned_positional_embedding(positions, emb_x, emb_y))
    # Multi-step grid path (tiles of 64, with row padding).
    out2 = jax.block_until_ready(
        learned_positional_embedding(positions, emb_x, emb_y, tile_n=64))

    ref = _reference(positions, emb_x, emb_y)
    assert out1.shape == (n, d_model), out1.shape
    assert jnp.allclose(out1, ref), "mismatch vs reference gather (default tile)"
    assert jnp.allclose(out2, ref), "mismatch vs reference gather (tile_n=64)"

    # Config 2: d_half = 64 (sub-128 halves) -> exercises the lane-dense
    # single-store (block-diagonal table) path.
    max_position2, d_model2, n2 = 32, 128, 37
    emb_x2 = jax.random.normal(k_x2, (max_position2, d_model2 // 2), dtype=jnp.float32)
    emb_y2 = jax.random.normal(k_y2, (max_position2, d_model2 // 2), dtype=jnp.float32)
    positions2 = jax.random.randint(k_pos2, (n2, 2), 0, max_position2, dtype=jnp.int32)

    out3 = jax.block_until_ready(
        learned_positional_embedding(positions2, emb_x2, emb_y2, tile_n=16))
    ref2 = _reference(positions2, emb_x2, emb_y2)
    assert out3.shape == (n2, d_model2), out3.shape
    assert jnp.allclose(out3, ref2), "mismatch vs reference gather (d_half=64)"

    print("KERNEL_OK")
</pallas_src>

<mosaic_0001>
module attributes {stable_mosaic.version = 11 : i64} {
  func.func @_embed_kernel(%arg0: i32, %arg1: memref<200x2xi32, #tpu.memory_space<vmem>>, %arg2: memref<256x256xf32, #tpu.memory_space<vmem>>, %arg3: memref<200x256xf32, #tpu.memory_space<vmem>>) attributes {dimension_semantics = [#tpu.dimension_semantics<parallel>], iteration_bounds = array<i64: 1>, scalar_prefetch = 0 : i64, scratch_operands = 0 : i64, tpu.core_type = #tpu.core_type<tc>, window_params = [{pipeline_mode = #tpu.pipeline_mode<synchronous>, transform_indices = @transform_0, window_bounds = array<i64: 200, 2>}, {pipeline_mode = #tpu.pipeline_mode<synchronous>, transform_indices = @transform_1, window_bounds = array<i64: 256, 256>}, {transform_indices = @transform_2, window_bounds = array<i64: 200, 256>}]} {
    %c200_i32 = arith.constant 200 : i32
    %0 = arith.muli %arg0, %c200_i32 : i32
    %1 = tpu.assume_multiple %0, 200 : i32
    %2 = arith.index_cast %1 : i32 to index
    %c0 = arith.constant 0 : index
    %3 = vector.load %arg1[%2, %c0] : memref<200x2xi32, #tpu.memory_space<vmem>>, vector<200x2xi32>
    %4 = tpu.iota {dimensions = array<i32: 1>} : vector<200x256xi32>
    %5 = vector.extract_strided_slice %3 {offsets = [0, 0], sizes = [200, 1], strides = [1, 1]} : vector<200x2xi32> to vector<200x1xi32>
    %6 = vector.broadcast %5 : vector<200x1xi32> to vector<200x256xi32>
    %7 = arith.cmpi eq, %4, %6 : vector<200x256xi32>
    %8 = vector.extract_strided_slice %3 {offsets = [0, 1], sizes = [200, 1], strides = [1, 1]} : vector<200x2xi32> to vector<200x1xi32>
    %c128_i32 = arith.constant 128 : i32
    %9 = vector.broadcast %c128_i32 : i32 to vector<200x1xi32>
    %10 = arith.addi %8, %9 : vector<200x1xi32>
    %11 = vector.broadcast %10 : vector<200x1xi32> to vector<200x256xi32>
    %12 = arith.cmpi eq, %4, %11 : vector<200x256xi32>
    %13 = arith.ori %7, %12 : vector<200x256xi1>
    %14 = arith.extui %13 : vector<200x256xi1> to vector<200x256xi32>
    %15 = arith.sitofp %14 : vector<200x256xi32> to vector<200x256xf32>
    %c0_0 = arith.constant 0 : index
    %c0_1 = arith.constant 0 : index
    %16 = vector.load %arg2[%c0_0, %c0_1] : memref<256x256xf32, #tpu.memory_space<vmem>>, vector<256x256xf32>
    %cst = arith.constant dense<0.000000e+00> : vector<200x256xf32>
    %17 = tpu.matmul %15, %16, %cst {dimension_numbers = #tpu.dot_dimension_numbers<[1], [0], [0], [1], [0, 0, 1, 1], [], []>} : vector<200x256xf32>, vector<256x256xf32>, vector<200x256xf32> -> vector<200x256xf32>
    %c0_2 = arith.constant 0 : index
    %c0_3 = arith.constant 0 : index
    %18 = vector.load %arg3[%c0_2, %c0_3] : memref<200x256xf32, #tpu.memory_space<vmem>>, vector<200x256xf32>
    tpu.vector_store %arg3[%c0_2, %c0_3], %17 {strides = array<i32>} : memref<200x256xf32, #tpu.memory_space<vmem>>, vector<200x256xf32>,
    return
  }
  func.func @transform_0(%arg0: i32) -> (i32, i32) {
    %c0_i32 = arith.constant 0 : i32
    %c0_i32_0 = arith.constant 0 : i32
    %c0_i32_1 = arith.constant 0 : i32
    return %c0_i32, %c0_i32_0 : i32, i32
  }
  func.func @transform_1(%arg0: i32) -> (i32, i32) {
    %c0_i32 = arith.constant 0 : i32
    %c0_i32_0 = arith.constant 0 : i32
    %c0_i32_1 = arith.constant 0 : i32
    return %c0_i32, %c0_i32_0 : i32, i32
  }
  func.func @transform_2(%arg0: i32) -> (i32, i32) {
    %c0_i32 = arith.constant 0 : i32
    %c0_i32_0 = arith.constant 0 : i32
    return %arg0, %c0_i32 : i32, i32
  }
}

</mosaic_0001>

<bundles_post_ra>
// kernel: tpu_custom_call.1
= control target key start
LH: loop header
LB: loop body
LE: loop exit
PB: predicated region body
PF: predicated region fallthrough
CT: control target
= control target key end

     0   :  { %7 = vsyncpa [#allocation3], 0  ;;  %s1419_s0 = inlined_call_operand.vmem [shape: s32[200,2], index: 0, kind: input, shape index: {}]   ;;  %s1420_s1 = inlined_call_operand.hbm [shape: f32[256,256], index: 1, kind: input, shape index: {}]   ;;  %s1421_s2 = inlined_call_operand.hbm [shape: f32[200,256], index: 2, kind: output, shape index: {}]  }
   0x1   :  { %8 = vsyncpa [#allocation4], 0  ;;  %s1070_s9 = smov [#allocation2]  }
   0x2   :  { %s16_s10 = sshll.u32 %s1070_s9, 4  ;;  %s17_s10 = int_to_ptr.vmem [resolvable:$true] %s16_s10 }
   0x3   :  { %s1034_s11 = scalar_lea.vmem %s17_s10, 8192  ;;  %p1039_p1 = scmp.lt.s32.totalorder %s17_s10, %s17_s10 }
   0x4   :  { %p1035_p0 = scmp.ne.s32.totalorder %s17_s10, %s1034_s11  ;;  %p1040_p2 = scmp.lt.s32.totalorder %s1034_s11, %s1034_s11 }
   0x6   :  { %p1041_p3 = por %p1040_p2, %p1039_p1 }
   0x8   :  { %p1042_p4 = pnand %p1041_p3, %p1035_p0 }
   0xa   :  { %1045 = shalt.err (!%p1042_p4)
}
   0xb   :  { %s1071_s12 = smov 256   ;;  %s1072_s13 = smov 16  }
   0xc   :  { %22 = dma.hbm_to_vmem [thread:$0]  %s1420_s1, 8192, %s17_s10, [#allocation3], %s1071_s12, %s1071_s12, %s1072_s13  }
   0xd   :  { %1066 = dma.done.wait [#allocation3], 8192  }
   0xe   :  { %1067 = vsyncadd [#allocation3], 4294959104  ;;  %v1073_v0 = vmov 0   ;;  %v29_v1 = vld [vmem:[%s1419_s0 + $0x8] sm:$0xff]  ;;  %v28_v2 = vld [vmem:[%s1419_s0] sm:$0xff]  ;;  %v1074_v5 = vmov 1  }
   0xf   :  { %999 = vset.pattern.permute.xlu1 %v1073_v0  ;;  %998 = vset.pattern.permute.xlu0 %v1073_v0  ;;  %v181_v3 = vadd.s32 128, %v28_v2  ;;  %v41_v4 = vld [vmem:[%s1419_s0 + $0x68] sm:$0xff]  ;;  %v512_v6 = vld [vmem:[#allocation2 + $0xf8] sm:$0xff]  ;;  %v182_v7 = vadd.s32 128, %v29_v1  ;;  %v511_v9 = vld [vmem:[#allocation2 + $0xf0] sm:$0xff] }
  0x10   :  { %60 = vperm.xlu1 %999, %v29_v1   ;;  %57 = vperm.xlu0 %998, %v28_v2   ;;  %v194_v8 = vadd.s32 128, %v41_v4  ;;  %v510_v10 = vld [vmem:[#allocation2 + $0xe8] sm:$0xff]  ;;  %v1113_v11 = vld [vmem:[%s1419_s0 + $0x18] sm:$0xff]  ;;  %v509_v12 = vld [vmem:[#allocation2 + $0xe0] sm:$0xff] }
  0x11   :  { %545 = vmatprep.subr.mxu0 %v512_v6  ;;  %927 = vmatprep.subr.mxu1 %v512_v6  ;;  %v508_v13 = vld [vmem:[#allocation2 + $0xd8] sm:$0xff]  ;;  %v507_v14 = vld [vmem:[#allocation2 + $0xd0] sm:$0xff]  ;;  %v184_v15 = vadd.s32 128, %v1113_v11  ;;  %v506_v16 = vld [vmem:[#allocation2 + $0xc8] sm:$0xff] }
  0x12   :  { %546 = vmatpush1.msra.mxu0 %v511_v9  ;;  %959 = vmatpush1.msra.mxu1 %v511_v9  ;;  %v1120_v17 = vld [vmem:[%s1419_s0 + $0x28] sm:$0xff]  ;;  %v30_v18 = vld [vmem:[%s1419_s0 + $0x10] sm:$0xff]  ;;  %v505_v19 = vld [vmem:[#allocation2 + $0xc0] sm:$0xff] }
  0x13   :  { %547 = vmatprep.subr.mxu0 %v510_v10  ;;  %928 = vmatprep.subr.mxu1 %v510_v10  ;;  %v504_v20 = vld [vmem:[#allocation2 + $0xb8] sm:$0xff]  ;;  %v186_v21 = vadd.s32 128, %v1120_v17  ;;  %v503_v22 = vld [vmem:[#allocation2 + $0xb0] sm:$0xff]  ;;  %v502_v24 = vld [vmem:[#allocation2 + $0xa8] sm:$0xff]  ;;  %v183_v25 = vadd.s32 128, %v30_v18 }
  0x14   :  { %96 = vperm.xlu1 %999, %v41_v4   ;;  %1000 = vset.pattern.permute.xlu0 %v1074_v5  ;;  %v1130_v23 = vld [vmem:[%s1419_s0 + $0x38] sm:$0xff]  ;;  %v42_v26 = vld [vmem:[%s1419_s0 + $0x70] sm:$0xff]  ;;  %v501_v27 = vld [vmem:[#allocation2 + $0xa0] sm:$0xff] }
  0x15   :  { %207 = vperm.xlu0 %1000, %v181_v3   ;;  %548 = vmatpush1.msra.mxu0 %v509_v12  ;;  %v188_v28 = vadd.s32 128, %v1130_v23  ;;  %v500_v29 = vld [vmem:[#allocation2 + $0x98] sm:$0xff]  ;;  %v1140_v30 = vld [vmem:[%s1419_s0 + $0x48] sm:$0xff]  ;;  %v195_v31 = vadd.s32 128, %v42_v26  ;;  %v499_v32 = vld [vmem:[#allocation2 + $0x90] sm:$0xff] }
  0x16   :  { %549 = vmatprep.subr.mxu0 %v508_v13  ;;  %960 = vmatpush1.msra.mxu1 %v509_v12  ;;  %v498_v33 = vld [vmem:[#allocation2 + $0x88] sm:$0xff]  ;;  %v190_v34 = vadd.s32 128, %v1140_v30  ;;  %v497_v35 = vld [vmem:[#allocation2 + $0x80] sm:$0xff]  ;;  %v1146_v36 = vld [vmem:[%s1419_s0 + $0x58] sm:$0xff] }
  0x17   :  { %550 = vmatpush1.msra.mxu0 %v507_v14  ;;  %929 = vmatprep.subr.mxu1 %v508_v13  ;;  %v496_v37 = vld [vmem:[#allocation2 + $0x78] sm:$0xff]  ;;  %v495_v38 = vld [vmem:[#allocation2 + $0x70] sm:$0xff]  ;;  %v192_v40 = vadd.s32 128, %v1146_v36  ;;  %v494_v41 = vld [vmem:[#allocation2 + $0x68] sm:$0xff] }
  0x18   :  { %1001 = vset.pattern.permute.xlu1 %v1074_v5  ;;  %551 = vmatprep.subr.mxu0 %v506_v16  ;;  %v43_v39 = vld [vmem:[%s1419_s0 + $0x78] sm:$0xff]  ;;  %v493_v42 = vld [vmem:[#allocation2 + $0x60] sm:$0xff]  ;;  %v491_v45 = vld [vmem:[#allocation2 + $0x50] sm:$0xff] }
  0x19   :  { %210 = vperm.xlu1 %1001, %v182_v7   ;;  %246 = vperm.xlu0 %1000, %v194_v8   ;;  %v492_v43 = vld [vmem:[#allocation2 + $0x58] sm:$0xff]  ;;  %v196_v44 = vadd.s32 128, %v43_v39  ;;  %v490_v46 = vld [vmem:[#allocation2 + $0x48] sm:$0xff]  ;;  %v489_v47 = vld [vmem:[#allocation2 + $0x40] sm:$0xff] }
  0x1a   :  { %552 = vmatpush1.msra.mxu0 %v505_v19  ;;  %961 = vmatpush1.msra.mxu1 %v507_v14  ;;  %v32_v48 = vld [vmem:[%s1419_s0 + $0x20] sm:$0xff]  ;;  %v488_v49 = vld [vmem:[#allocation2 + $0x38] sm:$0xff]  ;;  %v487_v50 = vld [vmem:[#allocation2 + $0x30] sm:$0xff] }
  0x1b   :  { %553 = vmatprep.subr.mxu0 %v504_v20  ;;  %930 = vmatprep.subr.mxu1 %v506_v16  ;;  %v486_v51 = vld [vmem:[#allocation2 + $0x28] sm:$0xff]  ;;  %v185_v52 = vadd.s32 128, %v32_v48  ;;  %v44_v53 = vld [vmem:[%s1419_s0 + $0x80] sm:$0xff]  ;;  %v484_v55 = vld [vmem:[#allocation2 + $0x18] sm:$0xff] }
  0x1c   :  { %554 = vmatpush1.msra.mxu0 %v503_v22  ;;  %962 = vmatpush1.msra.mxu1 %v505_v19  ;;  %v485_v54 = vld [vmem:[#allocation2 + $0x20] sm:$0xff]  ;;  %v483_v56 = vld [vmem:[#allocation2 + $0x10] sm:$0xff]  ;;  %v197_v57 = vadd.s32 128, %v44_v53  ;;  %v482_v58 = vld [vmem:[#allocation2 + $0x8] sm:$0xff] }
  0x1d   :  { %1002 = vset.pattern.permute.xlu1 %v1073_v0  ;;  %216 = vperm.xlu0 %1000, %v184_v15   ;;  %v481_v59 = vld [vmem:[#allocation2] sm:$0xff]  ;;  %v544_v60 = vld [vmem:[#allocation2 + $0x1f8] sm:$0xff]  ;;  %v46_v61 = vld [vmem:[%s1419_s0 + $0x90] sm:$0xff] }
  0x1e   :  { %63 = vperm.xlu1 %1002, %v30_v18   ;;  %555 = vmatprep.subr.mxu0 %v502_v24  ;;  %v543_v62 = vld [vmem:[#allocation2 + $0x1f0] sm:$0xff]  ;;  %v45_v63 = vld [vmem:[%s1419_s0 + $0x88] sm:$0xff]  ;;  %v541_v2 = vld [vmem:[#allocation2 + $0x1e0] sm:$0xff]  ;;  %v199_v19 = vadd.s32 128, %v46_v61 }
  0x1f   :  { %556 = vmatpush1.msra.mxu0 %v501_v27  ;;  %931 = vmatprep.subr.mxu1 %v504_v20  ;;  %v542_v1 = vld [vmem:[#allocation2 + $0x1e8] sm:$0xff]  ;;  %v540_v3 = vld [vmem:[#allocation2 + $0x1d8] sm:$0xff]  ;;  %v198_v4 = vadd.s32 128, %v45_v63  ;;  %v539_v6 = vld [vmem:[#allocation2 + $0x1d0] sm:$0xff] }
  0x20   :  { %557 = vmatprep.subr.mxu0 %v500_v29  ;;  %963 = vmatpush1.msra.mxu1 %v503_v22  ;;  %v1176_v7 = vld [vmem:[%s1419_s0 + $0xa0] sm:$0xff]  ;;  %v538_v8 = vld [vmem:[#allocation2 + $0x1c8] sm:$0xff]  ;;  %v536_v10 = vld [vmem:[#allocation2 + $0x1b8] sm:$0xff] }
  0x21   :  { %222 = vperm.xlu0 %1000, %v186_v21   ;;  %558 = vmatpush1.msra.mxu0 %v499_v32  ;;  %v537_v9 = vld [vmem:[#allocation2 + $0x1c0] sm:$0xff]  ;;  %v535_v12 = vld [vmem:[#allocation2 + $0x1b0] sm:$0xff]  ;;  %v534_v13 = vld [vmem:[#allocation2 + $0x1a8] sm:$0xff] }
  0x22   :  { %1003 = vset.pattern.permute.xlu1 %v1074_v5  ;;  %932 = vmatprep.subr.mxu1 %v502_v24  ;;  %v533_v14 = vld [vmem:[#allocation2 + $0x1a0] sm:$0xff]  ;;  %v1188_v16 = vld [vmem:[%s1419_s0 + $0xb0] sm:$0xff]  ;;  %v530_v20 = vld [vmem:[#allocation2 + $0x188] sm:$0xff] }
  0x23   :  { %213 = vperm.xlu1 %1003, %v183_v25   ;;  %559 = vmatprep.subr.mxu0 %v498_v33  ;;  %v531_v18 = vld [vmem:[#allocation2 + $0x190] sm:$0xff]  ;;  %v529_v21 = vld [vmem:[#allocation2 + $0x180] sm:$0xff]  ;;  %v528_v22 = vld [vmem:[#allocation2 + $0x178] sm:$0xff] }
  0x24   :  { %964 = vmatpush1.msra.mxu1 %v501_v27  ;;  %560 = vmatpush1.msra.mxu0 %v497_v35  ;;  %v527_v24 = vld [vmem:[#allocation2 + $0x170] sm:$0xff]  ;;  %v47_v25 = vld [vmem:[%s1419_s0 + $0x98] sm:$0xff]  ;;  %v525_v27 = vld [vmem:[#allocation2 + $0x160] sm:$0xff] }
  0x25   :  { %228 = vperm.xlu0 %1000, %v188_v28   ;;  %933 = vmatprep.subr.mxu1 %v500_v29  ;;  %v524_v28 = vld [vmem:[#allocation2 + $0x158] sm:$0xff]  ;;  %v523_v29 = vld [vmem:[#allocation2 + $0x150] sm:$0xff] }
  0x26   :  { %561 = vmatprep.subr.mxu0 %v496_v37  ;;  %965 = vmatpush1.msra.mxu1 %v499_v32  ;;  %v521_v32 = vld [vmem:[#allocation2 + $0x140] sm:$0xff] }
  0x27   :  { %249 = vperm.xlu1 %1003, %v195_v31   ;;  %562 = vmatpush1.msra.mxu0 %v495_v38  ;;  %v522_v31 = vld [vmem:[#allocation2 + $0x148] sm:$0xff] }
  0x28   :  { %934 = vmatprep.subr.mxu1 %v498_v33  ;;  %563 = vmatprep.subr.mxu0 %v494_v41  ;;  %v520_v33 = vld [vmem:[#allocation2 + $0x138] sm:$0xff] }
  0x29   :  { %234 = vperm.xlu0 %1000, %v190_v34   ;;  %966 = vmatpush1.msra.mxu1 %v497_v35  ;;  %v519_v34 = vld [vmem:[#allocation2 + $0x130] sm:$0xff]  ;;  %v36_v35 = vld [vmem:[%s1419_s0 + $0x40] sm:$0xff] }
  0x2a   :  { %564 = vmatpush1.msra.mxu0 %v493_v42  ;;  %935 = vmatprep.subr.mxu1 %v496_v37  ;;  %v517_v37 = vld [vmem:[#allocation2 + $0x120] sm:$0xff] }
  0x2b   :  { %1004 = vset.pattern.permute.xlu1 %v1073_v0  ;;  %565 = vmatprep.subr.mxu0 %v492_v43 }
  0x2c   :  { %102 = vperm.xlu1 %1004, %v43_v39   ;;  %967 = vmatpush1.msra.mxu1 %v495_v38  ;;  %v516_v38 = vld [vmem:[#allocation2 + $0x118] sm:$0xff]  ;;  %v515_v39 = vld [vmem:[#allocation2 + $0x110] sm:$0xff] }
  0x2d   :  { %240 = vperm.xlu0 %1000, %v192_v40   ;;  %566 = vmatpush1.msra.mxu0 %v491_v45  ;;  %v189_v40 = vadd.s32 128, %v36_v35 }
  0x2e   :  { %936 = vmatprep.subr.mxu1 %v494_v41  ;;  %567 = vmatprep.subr.mxu0 %v490_v46  ;;  %v514_v41 = vld [vmem:[#allocation2 + $0x108] sm:$0xff] }
  0x2f   :  { %968 = vmatpush1.msra.mxu1 %v493_v42  ;;  %568 = vmatpush1.msra.mxu0 %v489_v47  ;;  %v513_v42 = vld [vmem:[#allocation2 + $0x100] sm:$0xff] }
  0x30   :  { %1005 = vset.pattern.permute.xlu1 %v1074_v5  ;;  %937 = vmatprep.subr.mxu1 %v492_v43  ;;  %v201_v43 = vadd.s32 128, %v1176_v7 }
  0x31   :  { %252 = vperm.xlu1 %1005, %v196_v44   ;;  %1021 = vset.pattern.permute.xlu0 %v1073_v0  ;;  %v49_v44 = vld [vmem:[%s1419_s0 + $0xa8] sm:$0xff] }
  0x32   :  { %99 = vperm.xlu0 %1021, %v42_v26   ;;  %569 = vmatprep.subr.mxu0 %v488_v49  ;;  %v526_v26 = vld [vmem:[#allocation2 + $0x168] sm:$0xff] }
  0x33   :  { %969 = vmatpush1.msra.mxu1 %v491_v45  ;;  %570 = vmatpush1.msra.mxu0 %v487_v50  ;;  %v202_v45 = vadd.s32 128, %v49_v44 }
  0x34   :  { %938 = vmatprep.subr.mxu1 %v490_v46  ;;  %571 = vmatprep.subr.mxu0 %v486_v51  ;;  %v38_v46 = vld [vmem:[%s1419_s0 + $0x50] sm:$0xff] }
  0x35   :  { %1006 = vset.pattern.permute.xlu1 %v1073_v0  ;;  %970 = vmatpush1.msra.mxu1 %v489_v47  ;;  %v191_v47 = vadd.s32 128, %v38_v46 }
  0x36   :  { %69 = vperm.xlu1 %1006, %v32_v48   ;;  %66 = vperm.xlu0 %1021, %v1113_v11   ;;  %v34_v11 = vld [vmem:[%s1419_s0 + $0x30] sm:$0xff]  ;;  %v203_v48 = vadd.s32 128, %v1188_v16 }
  0x37   :  { %572 = vmatpush1.msra.mxu0 %v485_v54  ;;  %939 = vmatprep.subr.mxu1 %v488_v49  ;;  %v187_v15 = vadd.s32 128, %v34_v11  ;;  %v53_v49 = vlaneseq }
  0x38   :  { %573 = vmatprep.subr.mxu0 %v484_v55  ;;  %971 = vmatpush1.msra.mxu1 %v487_v50  ;;  %v51_v50 = vld [vmem:[%s1419_s0 + $0xb8] sm:$0xff] }
  0x39   :  { %574 = vmatpush1.msra.mxu0 %v483_v56  ;;  %940 = vmatprep.subr.mxu1 %v486_v51  ;;  %v1225_v51 = vand.u32 127, %v53_v49 }
  0x3a   :  { %1007 = vset.pattern.permute.xlu1 %v1074_v5  ;;  %105 = vperm.xlu0 %1021, %v44_v53  }
  0x3b   :  { %219 = vperm.xlu1 %1007, %v185_v52   ;;  %575 = vmatprep.subr.mxu0 %v482_v58 }
  0x3c   :  { %972 = vmatpush1.msra.mxu1 %v485_v54  ;;  %576 = vmatpush1.msra.mxu0 %v481_v59  ;;  %v204_v54 = vadd.s32 128, %v51_v50 }
  0x3d   :  { %941 = vmatprep.subr.mxu1 %v484_v55  ;;  %577 = vmatprep.subr.mxu0 %v544_v60  ;;  %v1229_v55 = vadd.s32 128, %v1225_v51 }
  0x3e   :  { %72 = vperm.xlu0 %1021, %v1120_v17   ;;  %973 = vmatpush1.msra.mxu1 %v483_v56  ;;  %v532_v17 = vld [vmem:[#allocation2 + $0x198] sm:$0xff] }
  0x3f   :  { %255 = vperm.xlu1 %1007, %v197_v57   ;;  %578 = vmatpush2.msra.mxu0 %v543_v62 }
  0x40   :  { %942 = vmatprep.subr.mxu1 %v482_v58  ;;  %579 = vmatprep.subr.mxu0 %v542_v1  ;;  %v40_v58 = vld [vmem:[%s1419_s0 + $0x60] sm:$0xff] }
  0x41   :  { %974 = vmatpush1.msra.mxu1 %v481_v59  ;;  %580 = vmatpush2.msra.mxu0 %v541_v2  ;;  %v1075_v59 = vmov 1.0  }
  0x42   :  { %111 = vperm.xlu0 %1021, %v46_v61   ;;  %943 = vmatprep.subr.mxu1 %v544_v60 }
  0x43   :  { %1008 = vset.pattern.permute.xlu1 %v1073_v0  ;;  %581 = vmatprep.subr.mxu0 %v540_v3 }
  0x44   :  { %108 = vperm.xlu1 %1008, %v45_v63   ;;  %975 = vmatpush2.msra.mxu1 %v543_v62  ;;  %v193_v62 = vadd.s32 128, %v40_v58 }
  0x45   :  { %582 = vmatpush2.msra.mxu0 %v539_v6  ;;  %944 = vmatprep.subr.mxu1 %v542_v1 }
  0x46   :  { %78 = vperm.xlu0 %1021, %v1130_v23   ;;  %583 = vmatprep.subr.mxu0 %v538_v8  ;;  %v1196_v23 = vld [vmem:[%s1419_s0 + $0xc0] sm:$0xff]  ;;  %s1076_s0 = smov [#allocation5]  }
  0x47   :  { %976 = vmatpush2.msra.mxu1 %v541_v2  ;;  %584 = vmatpush2.msra.mxu0 %v537_v9  ;;  %v205_v1 = vadd.s32 128, %v1196_v23  ;;  %s815_s10 = sshll.u32 %s1076_s0, 4  ;;  %s816_s10 = int_to_ptr.vmem [resolvable:$true] %s815_s10 }
  0x48   :  { %1009 = vset.pattern.permute.xlu1 %v1074_v5  ;;  %945 = vmatprep.subr.mxu1 %v540_v3  ;;  %s1046_s11 = scalar_lea.vmem %s816_s10, 6400  ;;  %p1051_p6 = scmp.lt.s32.totalorder %s816_s10, %s816_s10 }
  0x49   :  { %258 = vperm.xlu1 %1009, %v198_v4   ;;  %585 = vmatprep.subr.mxu0 %v536_v10  ;;  %p1047_p5 = scmp.ne.s32.totalorder %s816_s10, %s1046_s11  ;;  %p1052_p7 = scmp.lt.s32.totalorder %s1046_s11, %s1046_s11 }
  0x4a   :  { %117 = vperm.xlu0 %1021, %v1176_v7   ;;  %977 = vmatpush2.msra.mxu1 %v539_v6 }
  0x4b   :  { %586 = vmatpush2.msra.mxu0 %v535_v12  ;;  %946 = vmatprep.subr.mxu1 %v538_v8  ;;  %p1053_p8 = por %p1052_p7, %p1051_p6 }
  0x4c   :  { %587 = vmatprep.subr.mxu0 %v534_v13  ;;  %978 = vmatpush2.msra.mxu1 %v537_v9 }
  0x4d   :  { %1010 = vset.pattern.permute.xlu1 %v1073_v0  ;;  %588 = vmatpush2.msra.mxu0 %v533_v14  ;;  %p1054_p9 = pnand %p1053_p8, %p1047_p5 }
  0x4e   :  { %75 = vperm.xlu1 %1010, %v34_v11   ;;  %84 = vperm.xlu0 %1021, %v1140_v30   ;;  %v200_v30 = vadd.s32 128, %v47_v25 }
  0x4f   :  { %947 = vmatprep.subr.mxu1 %v536_v10  ;;  %589 = vmatprep.subr.mxu0 %v532_v17 }
  0x50   :  { %979 = vmatpush2.msra.mxu1 %v535_v12  ;;  %590 = vmatpush2.msra.mxu0 %v531_v18 }
  0x51   :  { %948 = vmatprep.subr.mxu1 %v534_v13  ;;  %591 = vmatprep.subr.mxu0 %v530_v20 }
  0x52   :  { %1011 = vset.pattern.permute.xlu1 %v1074_v5  ;;  %123 = vperm.xlu0 %1021, %v1188_v16  }
  0x53   :  { %225 = vperm.xlu1 %1011, %v187_v15   ;;  %980 = vmatpush2.msra.mxu1 %v533_v14 }
  0x54   :  { %592 = vmatpush2.msra.mxu0 %v529_v21  ;;  %949 = vmatprep.subr.mxu1 %v532_v17 }
  0x55   :  { %593 = vmatprep.subr.mxu0 %v528_v22  ;;  %981 = vmatpush2.msra.mxu1 %v531_v18 }
  0x56   :  { %90 = vperm.xlu0 %1021, %v1146_v36   ;;  %594 = vmatpush2.msra.mxu0 %v527_v24  ;;  %v518_v36 = vld [vmem:[#allocation2 + $0x128] sm:$0xff] }
  0x57   :  { %261 = vperm.xlu1 %1011, %v199_v19   ;;  %950 = vmatprep.subr.mxu1 %v530_v20 }
  0x58   :  { %595 = vmatprep.subr.mxu0 %v526_v26  ;;  %982 = vmatpush2.msra.mxu1 %v529_v21 }
  0x59   :  { %596 = vmatpush2.msra.mxu0 %v525_v27  ;;  %951 = vmatprep.subr.mxu1 %v528_v22 }
  0x5a   :  { %129 = vperm.xlu0 %1021, %v1196_v23   ;;  %597 = vmatprep.subr.mxu0 %v524_v28 }
  0x5b   :  { %1012 = vset.pattern.permute.xlu1 %v1073_v0  ;;  %983 = vmatpush2.msra.mxu1 %v527_v24 }
  0x5c   :  { %114 = vperm.xlu1 %1012, %v47_v25   ;;  %598 = vmatpush2.msra.mxu0 %v523_v29 }
  0x5d   :  { %952 = vmatprep.subr.mxu1 %v526_v26  ;;  %599 = vmatprep.subr.mxu0 %v522_v31 }
  0x5e   :  { %984 = vmatpush2.msra.mxu1 %v525_v27  ;;  %600 = vmatpush2.msra.mxu0 %v521_v32 }
  0x5f   :  { %953 = vmatprep.subr.mxu1 %v524_v28  ;;  %601 = vmatprep.subr.mxu0 %v520_v33 }
  0x60   :  { %1013 = vset.pattern.permute.xlu1 %v1074_v5  ;;  %985 = vmatpush2.msra.mxu1 %v523_v29 }
  0x61   :  { %264 = vperm.xlu1 %1013, %v200_v30   ;;  %602 = vmatpush2.msra.mxu0 %v519_v34 }
  0x62   :  { %954 = vmatprep.subr.mxu1 %v522_v31  ;;  %603 = vmatprep.subr.mxu0 %v518_v36 }
  0x63   :  { %986 = vmatpush2.msra.mxu1 %v521_v32  ;;  %604 = vmatpush2.msra.mxu0 %v517_v37 }
  0x64   :  { %955 = vmatprep.subr.mxu1 %v520_v33  ;;  %605 = vmatprep.subr.mxu0 %v516_v38 }
  0x65   :  { %1014 = vset.pattern.permute.xlu1 %v1073_v0  ;;  %987 = vmatpush2.msra.mxu1 %v519_v34 }
  0x66   :  { %81 = vperm.xlu1 %1014, %v36_v35   ;;  %606 = vmatpush2.msra.mxu0 %v515_v39 }
  0x67   :  { %956 = vmatprep.subr.mxu1 %v518_v36  ;;  %607 = vmatprep.subr.mxu0 %v514_v41 }
  0x68   :  { %988 = vmatpush2.msra.mxu1 %v517_v37  ;;  %608 = vmatpush2.msra.mxu0 %v513_v42 }
  0x69   :  { %957 = vmatprep.subr.mxu1 %v516_v38  ;;  %1025 = vset.pattern.permute.xlu0 %v1074_v5 }
  0x6a   :  { %1015 = vset.pattern.permute.xlu1 %v1074_v5  ;;  %989 = vmatpush2.msra.mxu1 %v515_v39 }
  0x6b   :  { %231 = vperm.xlu1 %1015, %v189_v40   ;;  %958 = vmatprep.subr.mxu1 %v514_v41 }
  0x6c   :  { %990 = vmatpush2.msra.mxu1 %v513_v42 }
  0x6f   :  { %267 = vperm.xlu1 %1015, %v201_v43  }
  0x73   :  { %1016 = vset.pattern.permute.xlu1 %v1073_v0 }
  0x74   :  { %120 = vperm.xlu1 %1016, %v49_v44  }
  0x78   :  { %1017 = vset.pattern.permute.xlu1 %v1074_v5 }
  0x79   :  { %270 = vperm.xlu1 %1017, %v202_v45  }
  0x7d   :  { %1018 = vset.pattern.permute.xlu1 %v1073_v0 }
  0x7e   :  { %87 = vperm.xlu1 %1018, %v38_v46  }
  0x82   :  { %1019 = vset.pattern.permute.xlu1 %v1074_v5 }
  0x83   :  { %237 = vperm.xlu1 %1019, %v191_v47  }
  0x87   :  { %273 = vperm.xlu1 %1019, %v203_v48  }
  0x8b   :  { %v61_v52 = vpop.permute.xlu1 %60  ;;  %1020 = vset.pattern.permute.xlu1 %v1073_v0  ;;  %v58_v53 = vpop.permute.xlu0 %57 }
  0x8c   :  { %126 = vperm.xlu1 %1020, %v51_v50   ;;  %vm131_vm0 = vcmp.eq.s32.totalorder %v1225_v51, %v58_v53  ;;  %vm132_vm1 = vcmp.eq.s32.totalorder %v1229_v55, %v58_v53  ;;  %vm133_vm6 = vcmp.eq.s32.totalorder %v1225_v51, %v61_v52  ;;  %vm134_vm10 = vcmp.eq.s32.totalorder %v1229_v55, %v61_v52 }
  0x8f   :  { %v97_v56 = vpop.permute.xlu1 %96 }
  0x90   :  { %1022 = vset.pattern.permute.xlu1 %v1074_v5  ;;  %v208_v57 = vpop.permute.xlu0 %207  ;;  %vm157_vm13 = vcmp.eq.s32.totalorder %v1225_v51, %v97_v56 }
  0x91   :  { %vm281_vm2 = vcmp.eq.s32.totalorder %v1225_v51, %v208_v57  ;;  %276 = vperm.xlu1 %1022, %v204_v54   ;;  %vm282_vm3 = vcmp.eq.s32.totalorder %v1229_v55, %v208_v57 }
  0x92   :  { %vm331_vm4 = vmor %vm131_vm0, %vm281_vm2  ;;  %vm158_vm0 = vcmp.eq.s32.totalorder %v1229_v55, %v97_v56 }
  0x93   :  { %vm332_vm5 = vmor %vm132_vm1, %vm282_vm3 }
  0x94   :  { %877 = vmatprep.mubr.msk.f32.mxu0 %vm332_vm5, %v1075_v59  ;;  %v211_v60 = vpop.permute.xlu1 %210  ;;  %v247_v61 = vpop.permute.xlu0 %246 }
  0x95   :  { %vm283_vm7 = vcmp.eq.s32.totalorder %v1225_v51, %v211_v60  ;;  %vm284_vm8 = vcmp.eq.s32.totalorder %v1229_v55, %v211_v60  ;;  %878 = vmatmul.mubr.msk.f32.vlgmr.msra.gmra.mxu0 %vm331_vm4, %v1075_v59  ;;  %vm307_vm9 = vcmp.eq.s32.totalorder %v1225_v51, %v247_v61  ;;  %1023 = vset.pattern.permute.xlu1 %v1073_v0 }
  0x96   :  { %vm333_vm11 = vmor %vm133_vm6, %vm283_vm7  ;;  %93 = vperm.xlu1 %1023, %v40_v58   ;;  %vm308_vm12 = vcmp.eq.s32.totalorder %v1229_v55, %v247_v61 }
  0x97   :  { %vm334_vm14 = vmor %vm134_vm10, %vm284_vm8 }
  0x98   :  { %vm357_vm15 = vmor %vm157_vm13, %vm307_vm9  ;;  %879 = vmatprep.mubr.msk.f32.mxu0 %vm334_vm14, %v1075_v59  ;;  %v217_v63 = vpop.permute.xlu0 %216 }
  0x99   :  { %vm358_vm1 = vmor %vm158_vm0, %vm308_vm12  ;;  %880 = vmatmul.mubr.msk.f32.gmra.mxu0 %vm333_vm11, %v1075_v59  ;;  %v64_v0 = vpop.permute.xlu1 %63  ;;  %vm287_vm12 = vcmp.eq.s32.totalorder %v1225_v51, %v217_v63 }
  0x9a   :  { %903 = vmatprep.mubr.msk.f32.mxu1 %vm358_vm1, %v1075_v59  ;;  %1024 = vset.pattern.permute.xlu1 %v1074_v5  ;;  %vm135_vm2 = vcmp.eq.s32.totalorder %v1225_v51, %v64_v0  ;;  %vm136_vm5 = vcmp.eq.s32.totalorder %v1229_v55, %v64_v0 }
  0x9b   :  { %904 = vmatmul.mubr.msk.f32.vlgmr.msra.gmra.mxu1 %vm357_vm15, %v1075_v59  ;;  %243 = vperm.xlu1 %1024, %v193_v62   ;;  %vm288_vm15 = vcmp.eq.s32.totalorder %v1229_v55, %v217_v63 }
  0x9c   :  { %v1256_v2 = vpop.permute.xlu0 %222 }
  0x9e   :  { %v214_v3 = vpop.permute.xlu1 %213 }
  0x9f   :  { %vm285_vm3 = vcmp.eq.s32.totalorder %v1225_v51, %v214_v3  ;;  %vm286_vm4 = vcmp.eq.s32.totalorder %v1229_v55, %v214_v3  ;;  %279 = vperm.xlu1 %1024, %v205_v1  }
  0xa0   :  { %vm335_vm6 = vmor %vm135_vm2, %vm285_vm3  ;;  %v1262_v4 = vpop.permute.xlu0 %228 }
  0xa1   :  { %vm336_vm7 = vmor %vm136_vm5, %vm286_vm4 }
  0xa2   :  { %881 = vmatprep.mubr.msk.f32.mxu0 %vm336_vm7, %v1075_v59  ;;  %v250_v5 = vpop.permute.xlu1 %249 }
  0xa3   :  { %882 = vmatmul.mubr.msk.f32.gmra.mxu0 %vm335_vm6, %v1075_v59  ;;  %vm309_vm10 = vcmp.eq.s32.totalorder %v1225_v51, %v250_v5  ;;  %vm310_vm13 = vcmp.eq.s32.totalorder %v1229_v55, %v250_v5 }
  0xa4   :  { %v1266_v6 = vpop.permute.xlu0 %234 }
  0xa7   :  { %v103_v7 = vpop.permute.xlu1 %102 }
  0xa8   :  { %v1268_v8 = vpop.permute.xlu0 %240  ;;  %vm162_vm0 = vcmp.eq.s32.totalorder %v1229_v55, %v103_v7 }
  0xac   :  { %v253_v9 = vpop.permute.xlu1 %252 }
  0xad   :  { %v100_v10 = vpop.permute.xlu0 %99  ;;  %vm312_vm11 = vcmp.eq.s32.totalorder %v1229_v55, %v253_v9  ;;  %vm311_vm5 = vcmp.eq.s32.totalorder %v1225_v51, %v253_v9 }
  0xae   :  { %vm159_vm8 = vcmp.eq.s32.totalorder %v1225_v51, %v100_v10  ;;  %vm160_vm9 = vcmp.eq.s32.totalorder %v1229_v55, %v100_v10  ;;  %vm362_vm2 = vmor %vm162_vm0, %vm312_vm11 }
  0xaf   :  { %vm359_vm14 = vmor %vm159_vm8, %vm309_vm10  ;;  %vm161_vm8 = vcmp.eq.s32.totalorder %v1225_v51, %v103_v7 }
  0xb0   :  { %vm360_vm1 = vmor %vm160_vm9, %vm310_vm13  ;;  %vm291_vm13 = vcmp.eq.s32.totalorder %v1225_v51, %v1256_v2 }
  0xb1   :  { %v70_v11 = vpop.permute.xlu1 %69  ;;  %v67_v12 = vpop.permute.xlu0 %66  ;;  %905 = vmatprep.mubr.msk.f32.mxu1 %vm360_vm1, %v1075_v59  ;;  %vm361_vm9 = vmor %vm161_vm8, %vm311_vm5 }
  0xb2   :  { %vm137_vm3 = vcmp.eq.s32.totalorder %v1225_v51, %v67_v12  ;;  %vm138_vm4 = vcmp.eq.s32.totalorder %v1229_v55, %v67_v12  ;;  %906 = vmatmul.mubr.msk.f32.gmra.mxu1 %vm359_vm14, %v1075_v59  ;;  %vm139_vm10 = vcmp.eq.s32.totalorder %v1225_v51, %v70_v11  ;;  %vm140_vm14 = vcmp.eq.s32.totalorder %v1229_v55, %v70_v11 }
  0xb3   :  { %vm337_vm6 = vmor %vm137_vm3, %vm287_vm12  ;;  %907 = vmatprep.mubr.msk.f32.mxu1 %vm362_vm2, %v1075_v59 }
  0xb4   :  { %vm338_vm7 = vmor %vm138_vm4, %vm288_vm15  ;;  %vm292_vm4 = vcmp.eq.s32.totalorder %v1229_v55, %v1256_v2 }
  0xb5   :  { %883 = vmatprep.mubr.msk.f32.mxu0 %vm338_vm7, %v1075_v59  ;;  %v106_v13 = vpop.permute.xlu0 %105 }
  0xb6   :  { %v220_v14 = vpop.permute.xlu1 %219  ;;  %884 = vmatmul.mubr.msk.f32.gmra.mxu0 %vm337_vm6, %v1075_v59  ;;  %908 = vmatmul.mubr.msk.f32.gmra.mxu1 %vm361_vm9, %v1075_v59  ;;  %vm163_vm1 = vcmp.eq.s32.totalorder %v1225_v51, %v106_v13  ;;  %vm164_vm2 = vcmp.eq.s32.totalorder %v1229_v55, %v106_v13 }
  0xb7   :  { %vm289_vm11 = vcmp.eq.s32.totalorder %v1225_v51, %v220_v14  ;;  %vm290_vm12 = vcmp.eq.s32.totalorder %v1229_v55, %v220_v14 }
  0xb8   :  { %vm339_vm15 = vmor %vm139_vm10, %vm289_vm11 }
  0xb9   :  { %vm340_vm0 = vmor %vm140_vm14, %vm290_vm12  ;;  %v73_v15 = vpop.permute.xlu0 %72 }
  0xba   :  { %885 = vmatprep.mubr.msk.f32.mxu0 %vm340_vm0, %v1075_v59  ;;  %v256_v16 = vpop.permute.xlu1 %255  ;;  %vm141_vm3 = vcmp.eq.s32.totalorder %v1225_v51, %v73_v15  ;;  %vm142_vm7 = vcmp.eq.s32.totalorder %v1229_v55, %v73_v15 }
  0xbb   :  { %vm313_vm5 = vcmp.eq.s32.totalorder %v1225_v51, %v256_v16  ;;  %vm314_vm6 = vcmp.eq.s32.totalorder %v1229_v55, %v256_v16  ;;  %886 = vmatmul.mubr.msk.f32.gmra.mxu0 %vm339_vm15, %v1075_v59  ;;  %vm341_vm8 = vmor %vm141_vm3, %vm291_vm13 }
  0xbc   :  { %vm363_vm9 = vmor %vm163_vm1, %vm313_vm5 }
  0xbd   :  { %vm364_vm10 = vmor %vm164_vm2, %vm314_vm6  ;;  %v112_v19 = vpop.permute.xlu0 %111  ;;  %vm296_vm2 = vcmp.eq.s32.totalorder %v1229_v55, %v1262_v4 }
  0xbe   :  { %909 = vmatprep.mubr.msk.f32.mxu1 %vm364_vm10, %v1075_v59  ;;  %vm342_vm11 = vmor %vm142_vm7, %vm292_vm4 }
  0xbf   :  { %910 = vmatmul.mubr.msk.f32.gmra.mxu1 %vm363_vm9, %v1075_v59  ;;  %v109_v17 = vpop.permute.xlu1 %108  ;;  %887 = vmatprep.mubr.msk.f32.mxu0 %vm342_vm11, %v1075_v59 }
  0xc0   :  { %888 = vmatmul.mubr.msk.f32.gmra.mxu0 %vm341_vm8, %v1075_v59  ;;  %vm165_vm12 = vcmp.eq.s32.totalorder %v1225_v51, %v109_v17  ;;  %vm166_vm15 = vcmp.eq.s32.totalorder %v1229_v55, %v109_v17  ;;  %vm295_vm8 = vcmp.eq.s32.totalorder %v1225_v51, %v1262_v4 }
  0xc1   :  { %v79_v21 = vpop.permute.xlu0 %78 }
  0xc2   :  { %vm146_vm3 = vcmp.eq.s32.totalorder %v1229_v55, %v79_v21  ;;  %vm145_vm9 = vcmp.eq.s32.totalorder %v1225_v51, %v79_v21 }
  0xc3   :  { %vm1320_vm4 = vmor %vm146_vm3, %vm296_vm2 }
  0xc4   :  { %v259_v18 = vpop.permute.xlu1 %258 }
  0xc5   :  { %vm315_vm14 = vcmp.eq.s32.totalorder %v1225_v51, %v259_v18  ;;  %vm316_vm13 = vcmp.eq.s32.totalorder %v1229_v55, %v259_v18  ;;  %v118_v27 = vpop.permute.xlu0 %117 }
  0xc6   :  { %vm365_vm0 = vmor %vm165_vm12, %vm315_vm14  ;;  %vm167_vm12 = vcmp.eq.s32.totalorder %v1225_v51, %v112_v19 }
  0xc7   :  { %vm366_vm1 = vmor %vm166_vm15, %vm316_vm13  ;;  %vm168_vm13 = vcmp.eq.s32.totalorder %v1229_v55, %v112_v19 }
  0xc8   :  { %911 = vmatprep.mubr.msk.f32.mxu1 %vm366_vm1, %v1075_v59  ;;  %vm345_vm15 = vmor %vm145_vm9, %vm295_vm8 }
  0xc9   :  { %912 = vmatmul.mubr.msk.f32.gmra.mxu1 %vm365_vm0, %v1075_v59  ;;  %v76_v20 = vpop.permute.xlu1 %75  ;;  %v85_v30 = vpop.permute.xlu0 %84 }
  0xca   :  { %vm143_vm5 = vcmp.eq.s32.totalorder %v1225_v51, %v76_v20  ;;  %vm144_vm10 = vcmp.eq.s32.totalorder %v1229_v55, %v76_v20 }
  0xcd   :  { %v124_v34 = vpop.permute.xlu0 %123 }
  0xce   :  { %v226_v22 = vpop.permute.xlu1 %225 }
  0xcf   :  { %vm293_vm6 = vcmp.eq.s32.totalorder %v1225_v51, %v226_v22  ;;  %vm294_vm7 = vcmp.eq.s32.totalorder %v1229_v55, %v226_v22 }
  0xd0   :  { %vm343_vm11 = vmor %vm143_vm5, %vm293_vm6 }
  0xd1   :  { %vm344_vm14 = vmor %vm144_vm10, %vm294_vm7  ;;  %v91_v36 = vpop.permute.xlu0 %90 }
  0xd2   :  { %889 = vmatprep.mubr.msk.f32.mxu0 %vm344_vm14, %v1075_v59  ;;  %v262_v24 = vpop.permute.xlu1 %261  ;;  %vm300_vm14 = vcmp.eq.s32.totalorder %v1229_v55, %v1266_v6 }
  0xd3   :  { %vm317_vm0 = vcmp.eq.s32.totalorder %v1225_v51, %v262_v24  ;;  %vm318_vm1 = vcmp.eq.s32.totalorder %v1229_v55, %v262_v24  ;;  %890 = vmatmul.mubr.msk.f32.gmra.mxu0 %vm343_vm11, %v1075_v59 }
  0xd4   :  { %vm367_vm2 = vmor %vm167_vm12, %vm317_vm0  ;;  %891 = vmatprep.mubr.msk.f32.mxu0 %vm1320_vm4, %v1075_v59 }
  0xd5   :  { %vm368_vm3 = vmor %vm168_vm13, %vm318_vm1  ;;  %vm150_vm13 = vcmp.eq.s32.totalorder %v1229_v55, %v85_v30  ;;  %vm171_vm1 = vcmp.eq.s32.totalorder %v1225_v51, %v118_v27  ;;  %v130_v43 = vpop.permute.xlu0 %129 }
  0xd6   :  { %913 = vmatprep.mubr.msk.f32.mxu1 %vm368_vm3, %v1075_v59  ;;  %vm172_vm3 = vcmp.eq.s32.totalorder %v1229_v55, %v118_v27 }
  0xd7   :  { %892 = vmatmul.mubr.msk.f32.gmra.mxu0 %vm345_vm15, %v1075_v59  ;;  %914 = vmatmul.mubr.msk.f32.gmra.mxu1 %vm367_vm2, %v1075_v59  ;;  %v115_v25 = vpop.permute.xlu1 %114 }
  0xd8   :  { %vm169_vm5 = vcmp.eq.s32.totalorder %v1225_v51, %v115_v25  ;;  %vm170_vm8 = vcmp.eq.s32.totalorder %v1229_v55, %v115_v25 }
  0xdc   :  { %v265_v26 = vpop.permute.xlu1 %264 }
  0xdd   :  { %vm319_vm6 = vcmp.eq.s32.totalorder %v1225_v51, %v265_v26  ;;  %vm320_vm7 = vcmp.eq.s32.totalorder %v1229_v55, %v265_v26 }
  0xde   :  { %vm369_vm9 = vmor %vm169_vm5, %vm319_vm6  ;;  %vm299_vm5 = vcmp.eq.s32.totalorder %v1225_v51, %v1266_v6  ;;  %vm149_vm6 = vcmp.eq.s32.totalorder %v1225_v51, %v85_v30 }
  0xdf   :  { %vm370_vm10 = vmor %vm170_vm8, %vm320_vm7 }
  0xe0   :  { %915 = vmatprep.mubr.msk.f32.mxu1 %vm370_vm10, %v1075_v59  ;;  %vm350_vm7 = vmor %vm150_vm13, %vm300_vm14 }
  0xe1   :  { %916 = vmatmul.mubr.msk.f32.gmra.mxu1 %vm369_vm9, %v1075_v59  ;;  %v82_v28 = vpop.permute.xlu1 %81 }
  0xe2   :  { %vm147_vm4 = vcmp.eq.s32.totalorder %v1225_v51, %v82_v28  ;;  %vm148_vm15 = vcmp.eq.s32.totalorder %v1229_v55, %v82_v28 }
  0xe6   :  { %v232_v29 = vpop.permute.xlu1 %231 }
  0xe7   :  { %vm297_vm11 = vcmp.eq.s32.totalorder %v1225_v51, %v232_v29  ;;  %vm298_vm12 = vcmp.eq.s32.totalorder %v1229_v55, %v232_v29 }
  0xe8   :  { %vm347_vm0 = vmor %vm147_vm4, %vm297_vm11 }
  0xe9   :  { %vm348_vm2 = vmor %vm148_vm15, %vm298_vm12 }
  0xea   :  { %893 = vmatprep.mubr.msk.f32.mxu0 %vm348_vm2, %v1075_v59  ;;  %v268_v31 = vpop.permute.xlu1 %267  ;;  %vm349_vm11 = vmor %vm149_vm6, %vm299_vm5  ;;  %vm304_vm6 = vcmp.eq.s32.totalorder %v1229_v55, %v1268_v8 }
  0xeb   :  { %vm321_vm8 = vcmp.eq.s32.totalorder %v1225_v51, %v268_v31  ;;  %vm322_vm9 = vcmp.eq.s32.totalorder %v1229_v55, %v268_v31  ;;  %894 = vmatmul.mubr.msk.f32.gmra.mxu0 %vm347_vm0, %v1075_v59 }
  0xec   :  { %vm371_vm10 = vmor %vm171_vm1, %vm321_vm8  ;;  %895 = vmatprep.mubr.msk.f32.mxu0 %vm350_vm7, %v1075_v59  ;;  %vm154_vm7 = vcmp.eq.s32.totalorder %v1229_v55, %v91_v36 }
  0xed   :  { %vm372_vm4 = vmor %vm172_vm3, %vm322_vm9 }
  0xee   :  { %917 = vmatprep.mubr.msk.f32.mxu1 %vm372_vm4, %v1075_v59  ;;  %vm303_vm4 = vcmp.eq.s32.totalorder %v1225_v51, %v1268_v8 }
  0xef   :  { %896 = vmatmul.mubr.msk.f32.gmra.mxu0 %vm349_vm11, %v1075_v59  ;;  %918 = vmatmul.mubr.msk.f32.gmra.mxu1 %vm371_vm10, %v1075_v59  ;;  %v121_v32 = vpop.permute.xlu1 %120  ;;  %vm175_vm11 = vcmp.eq.s32.totalorder %v1225_v51, %v124_v34 }
  0xf0   :  { %vm173_vm12 = vcmp.eq.s32.totalorder %v1225_v51, %v121_v32  ;;  %vm174_vm15 = vcmp.eq.s32.totalorder %v1229_v55, %v121_v32 }
  0xf4   :  { %v271_v33 = vpop.permute.xlu1 %270 }
  0xf5   :  { %vm323_vm14 = vcmp.eq.s32.totalorder %v1225_v51, %v271_v33  ;;  %vm324_vm13 = vcmp.eq.s32.totalorder %v1229_v55, %v271_v33 }
  0xf6   :  { %vm373_vm0 = vmor %vm173_vm12, %vm323_vm14  ;;  %vm153_vm12 = vcmp.eq.s32.totalorder %v1225_v51, %v91_v36 }
  0xf7   :  { %vm374_vm1 = vmor %vm174_vm15, %vm324_vm13 }
  0xf8   :  { %919 = vmatprep.mubr.msk.f32.mxu1 %vm374_vm1, %v1075_v59  ;;  %vm354_vm14 = vmor %vm154_vm7, %vm304_vm6 }
  0xf9   :  { %920 = vmatmul.mubr.msk.f32.gmra.mxu1 %vm373_vm0, %v1075_v59  ;;  %v88_v35 = vpop.permute.xlu1 %87  ;;  %vm176_vm0 = vcmp.eq.s32.totalorder %v1229_v55, %v124_v34 }
  0xfa   :  { %vm151_vm2 = vcmp.eq.s32.totalorder %v1225_v51, %v88_v35  ;;  %vm152_vm8 = vcmp.eq.s32.totalorder %v1229_v55, %v88_v35 }
  0xfe   :  { %v238_v37 = vpop.permute.xlu1 %237 }
  0xff   :  { %vm301_vm3 = vcmp.eq.s32.totalorder %v1225_v51, %v238_v37  ;;  %vm302_vm5 = vcmp.eq.s32.totalorder %v1229_v55, %v238_v37 }
 0x100   :  { %vm351_vm9 = vmor %vm151_vm2, %vm301_vm3 }
 0x101   :  { %vm352_vm10 = vmor %vm152_vm8, %vm302_vm5 }
 0x102   :  { %897 = vmatprep.mubr.msk.f32.mxu0 %vm352_vm10, %v1075_v59  ;;  %v274_v38 = vpop.permute.xlu1 %273  ;;  %vm353_vm3 = vmor %vm153_vm12, %vm303_vm4 }
 0x103   :  { %vm325_vm13 = vcmp.eq.s32.totalorder %v1225_v51, %v274_v38  ;;  %vm326_vm15 = vcmp.eq.s32.totalorder %v1229_v55, %v274_v38  ;;  %898 = vmatmul.mubr.msk.f32.gmra.mxu0 %vm351_vm9, %v1075_v59 }
 0x104   :  { %vm375_vm1 = vmor %vm175_vm11, %vm325_vm13  ;;  %899 = vmatprep.mubr.msk.f32.mxu0 %vm354_vm14, %v1075_v59 }
 0x105   :  { %vm376_vm2 = vmor %vm176_vm0, %vm326_vm15  ;;  %vm179_vm0 = vcmp.eq.s32.totalorder %v1225_v51, %v130_v43 }
 0x106   :  { %921 = vmatprep.mubr.msk.f32.mxu1 %vm376_vm2, %v1075_v59 }
 0x107   :  { %900 = vmatmul.mubr.msk.f32.gmra.mxu0 %vm353_vm3, %v1075_v59  ;;  %922 = vmatmul.mubr.msk.f32.gmra.mxu1 %vm375_vm1, %v1075_v59  ;;  %v127_v39 = vpop.permute.xlu1 %126  ;;  %vm180_vm3 = vcmp.eq.s32.totalorder %v1229_v55, %v130_v43 }
 0x108   :  { %vm177_vm5 = vcmp.eq.s32.totalorder %v1225_v51, %v127_v39  ;;  %vm178_vm8 = vcmp.eq.s32.totalorder %v1229_v55, %v127_v39 }
 0x10c   :  { %v277_v40 = vpop.permute.xlu1 %276 }
 0x10d   :  { %vm327_vm6 = vcmp.eq.s32.totalorder %v1225_v51, %v277_v40  ;;  %vm328_vm7 = vcmp.eq.s32.totalorder %v1229_v55, %v277_v40 }
 0x10e   :  { %vm377_vm9 = vmor %vm177_vm5, %vm327_vm6 }
 0x10f   :  { %vm378_vm10 = vmor %vm178_vm8, %vm328_vm7 }
 0x110   :  { %923 = vmatprep.mubr.msk.f32.mxu1 %vm378_vm10, %v1075_v59 }
 0x111   :  { %924 = vmatmul.mubr.msk.f32.gmra.mxu1 %vm377_vm9, %v1075_v59  ;;  %v94_v41 = vpop.permute.xlu1 %93 }
 0x112   :  { %vm155_vm4 = vcmp.eq.s32.totalorder %v1225_v51, %v94_v41  ;;  %vm156_vm14 = vcmp.eq.s32.totalorder %v1229_v55, %v94_v41 }
 0x116   :  { %v244_v42 = vpop.permute.xlu1 %243 }
 0x117   :  { %vm305_vm11 = vcmp.eq.s32.totalorder %v1225_v51, %v244_v42  ;;  %vm306_vm12 = vcmp.eq.s32.totalorder %v1229_v55, %v244_v42 }
 0x118   :  { %vm355_vm13 = vmor %vm155_vm4, %vm305_vm11 }
 0x119   :  { %vm356_vm15 = vmor %vm156_vm14, %vm306_vm12 }
 0x11a   :  { %901 = vmatprep.mubr.msk.f32.mxu0 %vm356_vm15, %v1075_v59  ;;  %v280_v44 = vpop.permute.xlu1 %279 }
 0x11b   :  { %vm329_vm1 = vcmp.eq.s32.totalorder %v1225_v51, %v280_v44  ;;  %vm330_vm2 = vcmp.eq.s32.totalorder %v1229_v55, %v280_v44  ;;  %902 = vmatmul.mubr.msk.f32.gmra.mxu0 %vm355_vm13, %v1075_v59 }
 0x11c   :  { %vm379_vm5 = vmor %vm179_vm0, %vm329_vm1 }
 0x11d   :  { %vm380_vm6 = vmor %vm180_vm3, %vm330_vm2 }
 0x11e   :  { %925 = vmatprep.mubr.msk.f32.mxu1 %vm380_vm6, %v1075_v59 }
 0x11f   :  { %926 = vmatmul.mubr.msk.f32.gmra.mxu1 %vm379_vm5, %v1075_v59 }
 0x155   :  { %v611_v45 = vpop.f32.mrf.mxu0 }
 0x156   :  { %760 = vst [vmem:[#allocation5] sm:$0xff] %v611_v45 }
 0x157   :  { %v613_v46 = vpop.f32.mrf.mxu0 }
 0x158   :  { %761 = vst [vmem:[#allocation5 + $0x8] sm:$0xff] %v613_v46 }
 0x159   :  { %v617_v47 = vpop.f32.mrf.mxu0 }
 0x15a   :  { %762 = vst [vmem:[#allocation5 + $0x10] sm:$0xff] %v617_v47 }
 0x15b   :  { %v689_v48 = vpop.f32.mrf.mxu1  ;;  %v619_v49 = vpop.f32.mrf.mxu0 }
 0x15c   :  { %786 = vst [vmem:[#allocation5 + $0xd0] sm:$0xff] %v689_v48  ;;  %763 = vst [vmem:[#allocation5 + $0x18] sm:$0xff] %v619_v49 }
 0x15d   :  { %v691_v50 = vpop.f32.mrf.mxu1 }
 0x15e   :  { %787 = vst [vmem:[#allocation5 + $0xd8] sm:$0xff] %v691_v50 }
 0x163   :  { %v623_v51 = vpop.f32.mrf.mxu0 }
 0x164   :  { %764 = vst [vmem:[#allocation5 + $0x20] sm:$0xff] %v623_v51 }
 0x165   :  { %v625_v52 = vpop.f32.mrf.mxu0 }
 0x166   :  { %765 = vst [vmem:[#allocation5 + $0x28] sm:$0xff] %v625_v52 }
 0x172   :  { %v695_v53 = vpop.f32.mrf.mxu1 }
 0x173   :  { %788 = vst [vmem:[#allocation5 + $0xe0] sm:$0xff] %v695_v53 }
 0x174   :  { %v697_v54 = vpop.f32.mrf.mxu1 }
 0x175   :  { %789 = vst [vmem:[#allocation5 + $0xe8] sm:$0xff] %v697_v54 }
 0x176   :  { %v629_v55 = vpop.f32.mrf.mxu0  ;;  %v701_v56 = vpop.f32.mrf.mxu1 }
 0x177   :  { %766 = vst [vmem:[#allocation5 + $0x30] sm:$0xff] %v629_v55  ;;  %790 = vst [vmem:[#allocation5 + $0xf0] sm:$0xff] %v701_v56 }
 0x178   :  { %v631_v57 = vpop.f32.mrf.mxu0  ;;  %v703_v58 = vpop.f32.mrf.mxu1 }
 0x179   :  { %767 = vst [vmem:[#allocation5 + $0x38] sm:$0xff] %v631_v57  ;;  %791 = vst [vmem:[#allocation5 + $0xf8] sm:$0xff] %v703_v58 }
 0x17b   :  { %v635_v59 = vpop.f32.mrf.mxu0 }
 0x17c   :  { %768 = vst [vmem:[#allocation5 + $0x40] sm:$0xff] %v635_v59 }
 0x17d   :  { %v637_v60 = vpop.f32.mrf.mxu0 }
 0x17e   :  { %769 = vst [vmem:[#allocation5 + $0x48] sm:$0xff] %v637_v60 }
 0x17f   :  { %v707_v61 = vpop.f32.mrf.mxu1 }
 0x180   :  { %792 = vst [vmem:[#allocation5 + $0x100] sm:$0xff] %v707_v61  ;;  %v641_v62 = vpop.f32.mrf.mxu0 }
 0x181   :  { %v709_v63 = vpop.f32.mrf.mxu1  ;;  %770 = vst [vmem:[#allocation5 + $0x50] sm:$0xff] %v641_v62 }
 0x182   :  { %793 = vst [vmem:[#allocation5 + $0x108] sm:$0xff] %v709_v63  ;;  %v643_v0 = vpop.f32.mrf.mxu0 }
 0x183   :  { %771 = vst [vmem:[#allocation5 + $0x58] sm:$0xff] %v643_v0 }
 0x189   :  { %v713_v1 = vpop.f32.mrf.mxu1 }
 0x18a   :  { %794 = vst [vmem:[#allocation5 + $0x110] sm:$0xff] %v713_v1 }
 0x18b   :  { %v715_v2 = vpop.f32.mrf.mxu1 }
 0x18c   :  { %795 = vst [vmem:[#allocation5 + $0x118] sm:$0xff] %v715_v2 }
 0x193   :  { %v647_v3 = vpop.f32.mrf.mxu0 }
 0x194   :  { %772 = vst [vmem:[#allocation5 + $0x60] sm:$0xff] %v647_v3 }
 0x195   :  { %v649_v4 = vpop.f32.mrf.mxu0 }
 0x196   :  { %773 = vst [vmem:[#allocation5 + $0x68] sm:$0xff] %v649_v4 }
 0x197   :  { %v653_v5 = vpop.f32.mrf.mxu0  ;;  %v719_v6 = vpop.f32.mrf.mxu1 }
 0x198   :  { %774 = vst [vmem:[#allocation5 + $0x70] sm:$0xff] %v653_v5  ;;  %796 = vst [vmem:[#allocation5 + $0x120] sm:$0xff] %v719_v6 }
 0x199   :  { %v655_v7 = vpop.f32.mrf.mxu0  ;;  %v721_v8 = vpop.f32.mrf.mxu1 }
 0x19a   :  { %775 = vst [vmem:[#allocation5 + $0x78] sm:$0xff] %v655_v7  ;;  %797 = vst [vmem:[#allocation5 + $0x128] sm:$0xff] %v721_v8 }
 0x1a1   :  { %v725_v9 = vpop.f32.mrf.mxu1 }
 0x1a2   :  { %798 = vst [vmem:[#allocation5 + $0x130] sm:$0xff] %v725_v9 }
 0x1a3   :  { %v727_v10 = vpop.f32.mrf.mxu1 }
 0x1a4   :  { %799 = vst [vmem:[#allocation5 + $0x138] sm:$0xff] %v727_v10 }
 0x1ab   :  { %v659_v11 = vpop.f32.mrf.mxu0 }
 0x1ac   :  { %776 = vst [vmem:[#allocation5 + $0x80] sm:$0xff] %v659_v11 }
 0x1ad   :  { %v661_v12 = vpop.f32.mrf.mxu0 }
 0x1ae   :  { %777 = vst [vmem:[#allocation5 + $0x88] sm:$0xff] %v661_v12 }
 0x1af   :  { %v665_v13 = vpop.f32.mrf.mxu0  ;;  %v731_v14 = vpop.f32.mrf.mxu1 }
 0x1b0   :  { %778 = vst [vmem:[#allocation5 + $0x90] sm:$0xff] %v665_v13  ;;  %800 = vst [vmem:[#allocation5 + $0x140] sm:$0xff] %v731_v14 }
 0x1b1   :  { %v667_v15 = vpop.f32.mrf.mxu0  ;;  %v733_v16 = vpop.f32.mrf.mxu1 }
 0x1b2   :  { %779 = vst [vmem:[#allocation5 + $0x98] sm:$0xff] %v667_v15  ;;  %801 = vst [vmem:[#allocation5 + $0x148] sm:$0xff] %v733_v16 }
 0x1b9   :  { %v737_v17 = vpop.f32.mrf.mxu1 }
 0x1ba   :  { %802 = vst [vmem:[#allocation5 + $0x150] sm:$0xff] %v737_v17 }
 0x1bb   :  { %v739_v18 = vpop.f32.mrf.mxu1 }
 0x1bc   :  { %803 = vst [vmem:[#allocation5 + $0x158] sm:$0xff] %v739_v18 }
 0x1c3   :  { %v671_v19 = vpop.f32.mrf.mxu0 }
 0x1c4   :  { %780 = vst [vmem:[#allocation5 + $0xa0] sm:$0xff] %v671_v19 }
 0x1c5   :  { %v673_v20 = vpop.f32.mrf.mxu0 }
 0x1c6   :  { %781 = vst [vmem:[#allocation5 + $0xa8] sm:$0xff] %v673_v20 }
 0x1c7   :  { %v677_v21 = vpop.f32.mrf.mxu0  ;;  %v743_v22 = vpop.f32.mrf.mxu1 }
 0x1c8   :  { %782 = vst [vmem:[#allocation5 + $0xb0] sm:$0xff] %v677_v21  ;;  %804 = vst [vmem:[#allocation5 + $0x160] sm:$0xff] %v743_v22 }
 0x1c9   :  { %v679_v23 = vpop.f32.mrf.mxu0  ;;  %v745_v24 = vpop.f32.mrf.mxu1 }
 0x1ca   :  { %783 = vst [vmem:[#allocation5 + $0xb8] sm:$0xff] %v679_v23  ;;  %805 = vst [vmem:[#allocation5 + $0x168] sm:$0xff] %v745_v24 }
 0x1d1   :  { %v749_v25 = vpop.f32.mrf.mxu1 }
 0x1d2   :  { %806 = vst [vmem:[#allocation5 + $0x170] sm:$0xff] %v749_v25 }
 0x1d3   :  { %v751_v26 = vpop.f32.mrf.mxu1 }
 0x1d4   :  { %807 = vst [vmem:[#allocation5 + $0x178] sm:$0xff] %v751_v26 }
 0x1db   :  { %v683_v27 = vpop.f32.mrf.mxu0 }
 0x1dc   :  { %784 = vst [vmem:[#allocation5 + $0xc0] sm:$0xff] %v683_v27 }
 0x1dd   :  { %v685_v28 = vpop.f32.mrf.mxu0 }
 0x1de   :  { %785 = vst [vmem:[#allocation5 + $0xc8] sm:$0xff] %v685_v28 }
 0x1df   :  { %v755_v29 = vpop.f32.mrf.mxu1 }
 0x1e0   :  { %808 = vst [vmem:[#allocation5 + $0x180] sm:$0xff] %v755_v29 }
 0x1e1   :  { %v757_v30 = vpop.f32.mrf.mxu1 }
 0x1e2   :  { %809 = vst [vmem:[#allocation5 + $0x188] sm:$0xff] %v757_v30 }
 0x1e3   :  { %1057 = shalt.err (!%p1054_p9)
}
 0x1e4   :  { %821 = dma.vmem_to_hbm [thread:$0]  %s816_s10, 6400, %s1421_s2, [#allocation4], %s1071_s12, %s1071_s12, %s1072_s13  }
 0x1e5   :  { %1068 = dma.done.wait [#allocation4], 6400  }
 0x1e6   :  { %1069 = vsyncadd [#allocation4], 4294960896 }
 0x1e7   :  { %825 = vsyncpa [#allocation3], 1 }
 0x1e8   :  { %826 = vsyncpa [#allocation4], 1 }

</bundles_post_ra>
